<compile_context>
chip_gen: v5e
topology: v5e:2x2
jax: 0.10.0
libtpu: 0.0.40
codegen_flags: <defaults>
</compile_context>

<pallas_src>
import jax
import jax.numpy as jnp
from jax.experimental import pallas as pl
from jax.experimental.pallas import tpu as pltpu


HIDDEN = 256


def _round_up(x, m):
    return ((x + m - 1) // m) * m


def _default_bf16_epilogue():
    # v5e has no bf16 VALU; keep the fc1/fc2 bias+ReLU epilogues in f32 there.
    try:
        kind = jax.devices()[0].device_kind.lower()
    except Exception:
        return True
    return not ("v5 lite" in kind or "v5e" in kind or "v5litepod" in kind)


def _make_policy_kernel(action_dim, bf16_epilogue):
    """Kernel closure; action_dim / bf16_epilogue are static Python values."""
    h_dtype = jnp.bfloat16 if bf16_epilogue else jnp.float32

    def policy_kernel(x_ref, w1_ref, b1_ref, w2_ref, b2_ref, wh_ref, bh_ref,
                      out_ref):
        # fc1 + relu: bf16 operands, f32 MXU accumulation.
        x = x_ref[...].astype(jnp.bfloat16)
        h1 = jnp.dot(x, w1_ref[...], preferred_element_type=jnp.float32)
        h1 = jnp.maximum(h1.astype(h_dtype) + b1_ref[...], 0).astype(jnp.bfloat16)

        # fc2 + relu
        h2 = jnp.dot(h1, w2_ref[...], preferred_element_type=jnp.float32)
        h2 = jnp.maximum(h2.astype(h_dtype) + b2_ref[...], 0).astype(jnp.bfloat16)

        # fused actor+critic head: single lane-dense [tb, 128] matmul, f32 bias
        head = jnp.dot(h2, wh_ref[...],
                       preferred_element_type=jnp.float32) + bh_ref[...]

        # column roles: [0, A) = logits, A = state value, rest = zero padding
        col = jax.lax.broadcasted_iota(jnp.int32, head.shape, 1)
        is_logit = col < action_dim

        # numerically-stable softmax restricted to the logit columns.
        # exp(-inf - m) == 0 keeps padding/value lanes at exactly zero, so no
        # second mask on `e`/`probs` is needed.
        masked = jnp.where(is_logit, head, -jnp.inf)
        m = jnp.max(masked, axis=-1, keepdims=True)
        e = jnp.exp(masked - m)
        probs = e * pl.reciprocal(jnp.sum(e, axis=-1, keepdims=True), approx=True)

        # packed, lane-dense output: probs | value | zeros, stored in bf16
        out_ref[...] = (probs + jnp.where(col == action_dim, head, 0.0)
                        ).astype(out_ref.dtype)

    return policy_kernel


def pack_params(params, *, bf16_epilogue=None):
    """One-time packing (do this at param-update time, NOT every forward):
       fuses actor/critic into a lane-dense [256, 128] slab and casts weights
       to bf16 (kernel accumulates in f32 on the MXU)."""
    if bf16_epilogue is None:
        bf16_epilogue = _default_bf16_epilogue()

    action_dim = int(params["wa"].shape[1])
    head_width = 128 * pl.cdiv(action_dim + 1, 128)   # >= 128, lane dense

    wh = jnp.zeros((HIDDEN, head_width), jnp.float32)
    wh = wh.at[:, :action_dim].set(params["wa"])
    wh = wh.at[:, action_dim:action_dim + 1].set(params["wc"])
    bh = jnp.zeros((1, head_width), jnp.float32)
    bh = bh.at[:, :action_dim].set(params["ba"].reshape(1, -1))
    bh = bh.at[:, action_dim:action_dim + 1].set(params["bc"].reshape(1, -1))

    bias_dtype = jnp.bfloat16 if bf16_epilogue else jnp.float32
    return {
        "w1": params["w1"].astype(jnp.bfloat16),
        "b1": params["b1"].reshape(1, HIDDEN).astype(bias_dtype),
        "w2": params["w2"].astype(jnp.bfloat16),
        "b2": params["b2"].reshape(1, HIDDEN).astype(bias_dtype),
        "wh": wh.astype(jnp.bfloat16),
        "bh": bh,                                   # head bias stays f32
        "_action_dim": action_dim,
        "_head_width": int(head_width),
        "_bf16_epilogue": bool(bf16_epilogue),
    }


def discrete_policy_network(x, packed, *, batch_tile=2048):
    """x: [batch, state_dim] float32; packed: output of pack_params().

    Returns (action_probs [B, action_dim] f32, state_value [B, 1] f32).
    """
    batch, state_dim = x.shape
    action_dim = packed["_action_dim"]
    head_width = packed["_head_width"]

    # Batch tiling: an EVEN number of >=2 grid steps whenever batch allows it
    # (so the "parallel" axis shards evenly across v7x's two TensorCores).
    # Tiles are multiples of 16 rows (bf16 output sublane packing); the ragged
    # final block is handled by Pallas OOB masking (no jnp.pad of x).
    batch_tile = max(16, _round_up(int(batch_tile), 16))
    if batch <= 16:
        tb = batch                              # single block == full array dim
    else:
        n_steps = 2 * pl.cdiv(batch, 2 * batch_tile)          # even step count
        tb = min(batch_tile, _round_up(pl.cdiv(batch, n_steps), 16))
    grid = (pl.cdiv(batch, tb),)

    out = pl.pallas_call(
        _make_policy_kernel(action_dim, packed["_bf16_epilogue"]),
        out_shape=jax.ShapeDtypeStruct((batch, head_width), jnp.bfloat16),
        grid=grid,
        in_specs=[
            pl.BlockSpec((tb, state_dim), lambda i: (i, 0)),          # x tile
            pl.BlockSpec((state_dim, HIDDEN), lambda i: (0, 0)),      # w1 (resident)
            pl.BlockSpec((1, HIDDEN), lambda i: (0, 0)),              # b1
            pl.BlockSpec((HIDDEN, HIDDEN), lambda i: (0, 0)),         # w2
            pl.BlockSpec((1, HIDDEN), lambda i: (0, 0)),              # b2
            pl.BlockSpec((HIDDEN, head_width), lambda i: (0, 0)),     # fused head W
            pl.BlockSpec((1, head_width), lambda i: (0, 0)),          # fused head b
        ],
        out_specs=pl.BlockSpec((tb, head_width), lambda i: (i, 0)),
        compiler_params=pltpu.CompilerParams(
            dimension_semantics=("parallel",),   # shards batch across TCs on v7x
            vmem_limit_bytes=48 * 1024 * 1024,
        ),
    )(x, packed["w1"], packed["b1"], packed["w2"], packed["b2"],
      packed["wh"], packed["bh"])

    probs = out[:, :action_dim].astype(jnp.float32)
    value = out[:, action_dim:action_dim + 1].astype(jnp.float32)
    return probs, value


def init_params(key, state_dim, action_dim):
    """Deterministic synthetic parameter init (shapes match the nn.Module __init__)."""
    ks = jax.random.split(key, 8)

    def lin(kw, kb, fan_in, fan_out):
        bound = 1.0 / jnp.sqrt(jnp.float32(fan_in))
        w = jax.random.uniform(kw, (fan_in, fan_out), jnp.float32, -bound, bound)
        b = jax.random.uniform(kb, (1, fan_out), jnp.float32, -bound, bound)
        return w, b

    w1, b1 = lin(ks[0], ks[1], state_dim, HIDDEN)
    w2, b2 = lin(ks[2], ks[3], HIDDEN, HIDDEN)
    wa, ba = lin(ks[4], ks[5], HIDDEN, action_dim)
    wc, bc = lin(ks[6], ks[7], HIDDEN, 1)
    return {"w1": w1, "b1": b1, "w2": w2, "b2": b2,
            "wa": wa, "ba": ba, "wc": wc, "bc": bc}


def reference_forward(x, p):
    h1 = jnp.maximum(x @ p["w1"] + p["b1"], 0.0)
    h2 = jnp.maximum(h1 @ p["w2"] + p["b2"], 0.0)
    probs = jax.nn.softmax(h2 @ p["wa"] + p["ba"], axis=-1)
    value = h2 @ p["wc"] + p["bc"]
    return probs, value


def _check(probs, value, ref_probs, ref_value, batch, action_dim):
    assert probs.shape == (batch, action_dim)
    assert value.shape == (batch, 1)
    # bf16 matmul operands + bf16 output + approx reciprocal -> loose tolerances
    assert jnp.allclose(probs, ref_probs, atol=1.5e-2, rtol=2e-2)
    assert jnp.allclose(value, ref_value, atol=4e-2, rtol=4e-2)
    assert jnp.allclose(jnp.sum(probs, axis=-1), 1.0, atol=1.5e-2)
    assert bool(jnp.all(probs >= 0.0))


if __name__ == "__main__":
    key = jax.random.PRNGKey(0)
    k_x, k_p, k_x2 = jax.random.split(key, 3)

    batch = 8          # small batch of flattened env states
    state_dim = 16     # len(env._get_state()) stand-in
    action_dim = 8     # discrete action count stand-in

    params = init_params(k_p, state_dim, action_dim)
    packed = pack_params(params)      # hoisted, one-time packing

    # --- small batch (single grid step, block == full array dims) ---
    x = jax.random.normal(k_x, (batch, state_dim), jnp.float32)
    probs, value = discrete_policy_network(x, packed)
    jax.block_until_ready((probs, value))
    ref_probs, ref_value = reference_forward(x, params)
    _check(probs, value, ref_probs, ref_value, batch, action_dim)

    # --- larger, non-multiple batch (even 2-step grid + ragged final block) ---
    batch2 = 300
    x2 = jax.random.normal(k_x2, (batch2, state_dim), jnp.float32)
    probs2, value2 = discrete_policy_network(x2, packed)
    jax.block_until_ready((probs2, value2))
    ref_probs2, ref_value2 = reference_forward(x2, params)
    _check(probs2, value2, ref_probs2, ref_value2, batch2, action_dim)

    print("KERNEL_OK")
</pallas_src>

<mosaic_0001>
module attributes {stable_mosaic.version = 11 : i64} {
  func.func @policy_kernel(%arg0: i32, %arg1: memref<8x16xf32, #tpu.memory_space<vmem>>, %arg2: memref<16x256xbf16, #tpu.memory_space<vmem>>, %arg3: memref<1x256xbf16, #tpu.memory_space<vmem>>, %arg4: memref<256x256xbf16, #tpu.memory_space<vmem>>, %arg5: memref<1x256xbf16, #tpu.memory_space<vmem>>, %arg6: memref<256x128xbf16, #tpu.memory_space<vmem>>, %arg7: memref<1x128xf32, #tpu.memory_space<vmem>>, %arg8: memref<8x128xbf16, #tpu.memory_space<vmem>>) attributes {dimension_semantics = [#tpu.dimension_semantics<parallel>], iteration_bounds = array<i64: 1>, scalar_prefetch = 0 : i64, scratch_operands = 0 : i64, tpu.core_type = #tpu.core_type<tc>, window_params = [{transform_indices = @transform_0, window_bounds = array<i64: 8, 16>}, {pipeline_mode = #tpu.pipeline_mode<synchronous>, transform_indices = @transform_1, window_bounds = array<i64: 16, 256>}, {pipeline_mode = #tpu.pipeline_mode<synchronous>, transform_indices = @transform_2, window_bounds = array<i64: 1, 256>}, {pipeline_mode = #tpu.pipeline_mode<synchronous>, transform_indices = @transform_3, window_bounds = array<i64: 256, 256>}, {pipeline_mode = #tpu.pipeline_mode<synchronous>, transform_indices = @transform_4, window_bounds = array<i64: 1, 256>}, {pipeline_mode = #tpu.pipeline_mode<synchronous>, transform_indices = @transform_5, window_bounds = array<i64: 256, 128>}, {pipeline_mode = #tpu.pipeline_mode<synchronous>, transform_indices = @transform_6, window_bounds = array<i64: 1, 128>}, {transform_indices = @transform_7, window_bounds = array<i64: 8, 128>}]} {
    %c0 = arith.constant 0 : index
    %c0_0 = arith.constant 0 : index
    %0 = vector.load %arg1[%c0, %c0_0] : memref<8x16xf32, #tpu.memory_space<vmem>>, vector<8x16xf32>
    %1 = arith.truncf %0 : vector<8x16xf32> to vector<8x16xbf16>
    %c0_1 = arith.constant 0 : index
    %c0_2 = arith.constant 0 : index
    %2 = vector.load %arg2[%c0_1, %c0_2] : memref<16x256xbf16, #tpu.memory_space<vmem>>, vector<16x256xbf16>
    %cst = arith.constant dense<0.000000e+00> : vector<8x256xf32>
    %3 = tpu.matmul %1, %2, %cst {dimension_numbers = #tpu.dot_dimension_numbers<[1], [0], [0], [1], [0, 0, 1, 1], [], []>} : vector<8x16xbf16>, vector<16x256xbf16>, vector<8x256xf32> -> vector<8x256xf32>
    %4 = arith.truncf %3 : vector<8x256xf32> to vector<8x256xbf16>
    %c0_3 = arith.constant 0 : index
    %c0_4 = arith.constant 0 : index
    %5 = vector.load %arg3[%c0_3, %c0_4] : memref<1x256xbf16, #tpu.memory_space<vmem>>, vector<1x256xbf16>
    %6 = vector.broadcast %5 : vector<1x256xbf16> to vector<8x256xbf16>
    %7 = arith.addf %4, %6 : vector<8x256xbf16>
    %cst_5 = arith.constant 0.000000e+00 : bf16
    %8 = vector.broadcast %cst_5 : bf16 to vector<8x256xbf16>
    %9 = arith.maximumf %7, %8 : vector<8x256xbf16>
    %c0_6 = arith.constant 0 : index
    %c0_7 = arith.constant 0 : index
    %10 = vector.load %arg4[%c0_6, %c0_7] : memref<256x256xbf16, #tpu.memory_space<vmem>>, vector<256x256xbf16>
    %cst_8 = arith.constant dense<0.000000e+00> : vector<8x256xf32>
    %11 = tpu.matmul %9, %10, %cst_8 {dimension_numbers = #tpu.dot_dimension_numbers<[1], [0], [0], [1], [0, 0, 1, 1], [], []>} : vector<8x256xbf16>, vector<256x256xbf16>, vector<8x256xf32> -> vector<8x256xf32>
    %12 = arith.truncf %11 : vector<8x256xf32> to vector<8x256xbf16>
    %c0_9 = arith.constant 0 : index
    %c0_10 = arith.constant 0 : index
    %13 = vector.load %arg5[%c0_9, %c0_10] : memref<1x256xbf16, #tpu.memory_space<vmem>>, vector<1x256xbf16>
    %14 = vector.broadcast %13 : vector<1x256xbf16> to vector<8x256xbf16>
    %15 = arith.addf %12, %14 : vector<8x256xbf16>
    %cst_11 = arith.constant 0.000000e+00 : bf16
    %16 = vector.broadcast %cst_11 : bf16 to vector<8x256xbf16>
    %17 = arith.maximumf %15, %16 : vector<8x256xbf16>
    %c0_12 = arith.constant 0 : index
    %c0_13 = arith.constant 0 : index
    %18 = vector.load %arg6[%c0_12, %c0_13] : memref<256x128xbf16, #tpu.memory_space<vmem>>, vector<256x128xbf16>
    %cst_14 = arith.constant dense<0.000000e+00> : vector<8x128xf32>
    %19 = tpu.matmul %17, %18, %cst_14 {dimension_numbers = #tpu.dot_dimension_numbers<[1], [0], [0], [1], [0, 0, 1, 1], [], []>} : vector<8x256xbf16>, vector<256x128xbf16>, vector<8x128xf32> -> vector<8x128xf32>
    %c0_15 = arith.constant 0 : index
    %c0_16 = arith.constant 0 : index
    %20 = vector.load %arg7[%c0_15, %c0_16] : memref<1x128xf32, #tpu.memory_space<vmem>>, vector<1x128xf32>
    %21 = vector.broadcast %20 : vector<1x128xf32> to vector<8x128xf32>
    %22 = arith.addf %19, %21 : vector<8x128xf32>
    %23 = tpu.iota {dimensions = array<i32: 1>} : vector<8x128xi32>
    %c8_i32 = arith.constant 8 : i32
    %24 = vector.broadcast %c8_i32 : i32 to vector<8x128xi32>
    %25 = arith.cmpi slt, %23, %24 : vector<8x128xi32>
    %cst_17 = arith.constant 0xFF800000 : f32
    %26 = vector.broadcast %cst_17 : f32 to vector<8x128xf32>
    %27 = arith.select %25, %22, %26 : vector<8x128xi1>, vector<8x128xf32>
    %cst_18 = arith.constant dense<0xFF800000> : vector<8xf32>
    %28 = vector.multi_reduction <maximumf>, %27, %cst_18 [1] : vector<8x128xf32> to vector<8xf32>
    %29 = vector.shape_cast %28 : vector<8xf32> to vector<8x1xf32>
    %30 = vector.broadcast %29 : vector<8x1xf32> to vector<8x128xf32>
    %31 = arith.subf %27, %30 : vector<8x128xf32>
    %32 = math.exp %31 : vector<8x128xf32>
    %cst_19 = arith.constant dense<0.000000e+00> : vector<8xf32>
    %33 = vector.multi_reduction <add>, %32, %cst_19 [1] : vector<8x128xf32> to vector<8xf32>
    %34 = vector.shape_cast %33 : vector<8xf32> to vector<8x1xf32>
    %35 = tpu.reciprocal %34 {approx = true} : vector<8x1xf32> -> vector<8x1xf32>
    %36 = vector.broadcast %35 : vector<8x1xf32> to vector<8x128xf32>
    %37 = arith.mulf %32, %36 : vector<8x128xf32>
    %c8_i32_20 = arith.constant 8 : i32
    %38 = vector.broadcast %c8_i32_20 : i32 to vector<8x128xi32>
    %39 = arith.cmpi eq, %23, %38 : vector<8x128xi32>
    %cst_21 = arith.constant 0.000000e+00 : f32
    %40 = vector.broadcast %cst_21 : f32 to vector<8x128xf32>
    %41 = arith.select %39, %22, %40 : vector<8x128xi1>, vector<8x128xf32>
    %42 = arith.addf %37, %41 : vector<8x128xf32>
    %43 = arith.truncf %42 : vector<8x128xf32> to vector<8x128xbf16>
    %c0_22 = arith.constant 0 : index
    %c0_23 = arith.constant 0 : index
    %44 = vector.load %arg8[%c0_22, %c0_23] : memref<8x128xbf16, #tpu.memory_space<vmem>>, vector<8x128xbf16>
    tpu.vector_store %arg8[%c0_22, %c0_23], %43 {strides = array<i32>} : memref<8x128xbf16, #tpu.memory_space<vmem>>, vector<8x128xbf16>,
    return
  }
  func.func @transform_0(%arg0: i32) -> (i32, i32) {
    %c0_i32 = arith.constant 0 : i32
    %c0_i32_0 = arith.constant 0 : i32
    return %arg0, %c0_i32 : i32, i32
  }
  func.func @transform_1(%arg0: i32) -> (i32, i32) {
    %c0_i32 = arith.constant 0 : i32
    %c0_i32_0 = arith.constant 0 : i32
    %c0_i32_1 = arith.constant 0 : i32
    return %c0_i32, %c0_i32_0 : i32, i32
  }
  func.func @transform_2(%arg0: i32) -> (i32, i32) {
    %c0_i32 = arith.constant 0 : i32
    %c0_i32_0 = arith.constant 0 : i32
    %c0_i32_1 = arith.constant 0 : i32
    return %c0_i32, %c0_i32_0 : i32, i32
  }
  func.func @transform_3(%arg0: i32) -> (i32, i32) {
    %c0_i32 = arith.constant 0 : i32
    %c0_i32_0 = arith.constant 0 : i32
    %c0_i32_1 = arith.constant 0 : i32
    return %c0_i32, %c0_i32_0 : i32, i32
  }
  func.func @transform_4(%arg0: i32) -> (i32, i32) {
    %c0_i32 = arith.constant 0 : i32
    %c0_i32_0 = arith.constant 0 : i32
    %c0_i32_1 = arith.constant 0 : i32
    return %c0_i32, %c0_i32_0 : i32, i32
  }
  func.func @transform_5(%arg0: i32) -> (i32, i32) {
    %c0_i32 = arith.constant 0 : i32
    %c0_i32_0 = arith.constant 0 : i32
    %c0_i32_1 = arith.constant 0 : i32
    return %c0_i32, %c0_i32_0 : i32, i32
  }
  func.func @transform_6(%arg0: i32) -> (i32, i32) {
    %c0_i32 = arith.constant 0 : i32
    %c0_i32_0 = arith.constant 0 : i32
    %c0_i32_1 = arith.constant 0 : i32
    return %c0_i32, %c0_i32_0 : i32, i32
  }
  func.func @transform_7(%arg0: i32) -> (i32, i32) {
    %c0_i32 = arith.constant 0 : i32
    %c0_i32_0 = arith.constant 0 : i32
    return %arg0, %c0_i32 : i32, i32
  }
}

</mosaic_0001>

<bundles_post_ra>
// kernel: tpu_custom_call.1
= control target key start
LH: loop header
LB: loop body
LE: loop exit
PB: predicated region body
PF: predicated region fallthrough
CT: control target
= control target key end

     0   :  { %12 = vsyncpa [#allocation3], 0  ;;  %s1130_s0 = inlined_call_operand.hbm [shape: f32[8,16], index: 0, kind: input, shape index: {}]   ;;  %s1131_s1 = inlined_call_operand.hbm [shape: bf16[16,256], index: 1, kind: input, shape index: {}]   ;;  %s1132_s2 = inlined_call_operand.hbm [shape: bf16[1,256], index: 2, kind: input, shape index: {}]   ;;  %s1133_s3 = inlined_call_operand.hbm [shape: bf16[256,256], index: 3, kind: input, shape index: {}]   ;;  %s1134_s4 = inlined_call_operand.vmem [shape: bf16[1,256], index: 4, kind: input, shape index: {}]   ;;  %s1135_s5 = inlined_call_operand.hbm [shape: bf16[256,128], index: 5, kind: input, shape index: {}]   ;;  %s1136_s6 = inlined_call_operand.vmem [shape: f32[1,128], index: 6, kind: input, shape index: {}]   ;;  %s1137_s7 = inlined_call_operand.hbm [shape: bf16[8,128], index: 7, kind: output, shape index: {}]  }
   0x1   :  { %13 = vsyncpa [#allocation6], 0 }
   0x2   :  { %14 = vsyncpa [#allocation9], 0  ;;  %s31_s26 = sshll.u32 %s1131_s1, 4  ;;  %s32_s26 = int_to_ptr.hbm [resolvable:$true] %s31_s26 }
   0x3   :  { %15 = vsyncpa [#allocation4], 0  ;;  %s1054_s27 = smov [#allocation5]   ;;  %s55_s8 = sshll.u32 %s1133_s3, 4  ;;  %s56_s8 = int_to_ptr.hbm [resolvable:$true] %s55_s8 }
   0x4   :  { %s33_s28 = sshll.u32 %s1054_s27, 4  ;;  %s1055_s9 = smov 128   ;;  %s34_s28 = int_to_ptr.vmem [resolvable:$true] %s33_s28 }
   0x5   :  { %s1056_s10 = smov 8   ;;  %s1057_s11 = smov [#allocation8]  }
   0x6   :  { %39 = dma.hbm_to_vmem [thread:$0]  %s32_s26, 256, %s34_s28, [#allocation6], %s1055_s9, %s1055_s9, %s1056_s10  }
   0x7   :  { %s57_s12 = sshll.u32 %s1057_s11, 4  ;;  %s21_s15 = sshll.u32 %s1130_s0, 4  ;;  %s58_s12 = int_to_ptr.vmem [resolvable:$true] %s57_s12  ;;  %s22_s15 = int_to_ptr.hbm [resolvable:$true] %s21_s15 }
   0x8   :  { %63 = dma.hbm_to_vmem [thread:$0]  %s56_s8, 4096, %s58_s12, [#allocation9], %s1055_s9, %s1055_s9, %s1056_s10  }
   0x9   :  { %s45_s17 = sshll.u32 %s1132_s2, 4  ;;  %s1058_s18 = smov [#allocation2]   ;;  %s46_s17 = int_to_ptr.hbm [resolvable:$true] %s45_s17 }
   0xa   :  { %s23_s19 = sshll.u32 %s1058_s18, 4  ;;  %s1059_s3 = smov [#allocation7]   ;;  %s24_s19 = int_to_ptr.vmem [resolvable:$true] %s23_s19 }
   0xb   :  { %26 = dma.hbm_to_vmem [thread:$0]  %s22_s15, 128, %s24_s19, [#allocation3]  }
   0xc   :  { %s47_s20 = sshll.u32 %s1059_s3, 4  ;;  %s70_s23 = sshll.u32 %s1135_s5, 4  ;;  %s48_s20 = int_to_ptr.vmem [resolvable:$true] %s47_s20  ;;  %s71_s23 = int_to_ptr.hbm [resolvable:$true] %s70_s23 }
   0xd   :  { %50 = dma.hbm_to_vmem [thread:$0]  %s46_s17, 32, %s48_s20, [#allocation6]  }
   0xe   :  { %s1060_s0 = smov [#allocation10]   ;;  %s1061_s25 = smov 64  }
   0xf   :  { %s72_s24 = sshll.u32 %s1060_s0, 4  ;;  %s1062_s26 = smov 4   ;;  %s73_s24 = int_to_ptr.vmem [resolvable:$true] %s72_s24 }
  0x10   :  { %78 = dma.hbm_to_vmem [thread:$0]  %s71_s23, 2048, %s73_s24, [#allocation9], %s1061_s25, %s1061_s25, %s1062_s26  }
  0x11   :  { %1046 = dma.done.wait [#allocation3], 128  }
  0x12   :  { %1047 = vsyncadd [#allocation3], 4294967168 }
  0x13   :  { %1048 = dma.done.wait [#allocation6], 288  }
  0x14   :  { %1049 = vsyncadd [#allocation6], 4294967008 }
  0x15   :  { %1050 = dma.done.wait [#allocation9], 6144  }
  0x16   :  { %1051 = vsyncadd [#allocation9], 4294961152  ;;  %v637_v0 = vld [vmem:[#allocation5] sm:$0xf]  ;;  %v838_v1 = vld [vmem:[#allocation5 + $0x4] sm:$0xf0] }
  0x17   :  { %v837_v2 = vld [vmem:[#allocation5 + $0x4] sm:$0xf]  ;;  %v638_v3 = vor.u32 %v838_v1, %v637_v0  ;;  %v639_v4 = vld [vmem:[#allocation5 + $0x8] sm:$0xf0]  ;;  %v102_v5 = vld [vmem:[#allocation2] sm:$0xff]  ;;  %vm116_vm0 = vcmask 130048  }
  0x18   :  { %v703_v6 = vld [vmem:[#allocation8 + $0x70] sm:$0xf]  ;;  %v642_v7 = vor.u32 %v837_v2, %v639_v4  ;;  %v103_v8 = vpack.c.bf16 %v102_v5, %v102_v5  ;;  %v854_v9 = vld [vmem:[#allocation8 + $0x74] sm:$0xf0]  ;;  %v853_v14 = vld [vmem:[#allocation8 + $0x74] sm:$0xf] }
  0x19   :  { %v767_v10 = vld [vmem:[#allocation8 + $0xf0] sm:$0xf]  ;;  %v870_v11 = vld [vmem:[#allocation8 + $0xf4] sm:$0xf0]  ;;  %127 = vmatpush.bf16.msra.mxu0 %v638_v3  ;;  %v704_v12 = vor.u32 %v854_v9, %v703_v6  ;;  %v705_v15 = vld [vmem:[#allocation8 + $0x78] sm:$0xf0] }
  0x1a   :  { %v768_v13 = vor.u32 %v870_v11, %v767_v10  ;;  %v869_v16 = vld [vmem:[#allocation8 + $0xf4] sm:$0xf]  ;;  %140 = vmatpush.bf16.msra.mxu1 %v642_v7  ;;  %v708_v17 = vor.u32 %v853_v14, %v705_v15  ;;  %v769_v18 = vld [vmem:[#allocation8 + $0xf8] sm:$0xf0]  ;;  %v695_v19 = vld [vmem:[#allocation8 + $0x60] sm:$0xf] }
  0x1b   :  { %v852_v20 = vld [vmem:[#allocation8 + $0x64] sm:$0xf0]  ;;  %363 = vmatpush.bf16.msra.mxu2 %v704_v12  ;;  %v772_v21 = vor.u32 %v869_v16, %v769_v18  ;;  %v759_v23 = vld [vmem:[#allocation8 + $0xe0] sm:$0xf]  ;;  %v851_v25 = vld [vmem:[#allocation8 + $0x64] sm:$0xf] }
  0x1c   :  { %376 = vmatpush.bf16.msra.mxu3 %v768_v13  ;;  %v696_v22 = vor.u32 %v852_v20, %v695_v19  ;;  %v868_v24 = vld [vmem:[#allocation8 + $0xe4] sm:$0xf0]  ;;  %643 = vmatmul.msk.bf16.vlgmr.msra.gmra.mxu0 %vm116_vm0, %v103_v8  ;;  %v697_v27 = vld [vmem:[#allocation8 + $0x68] sm:$0xf0]  ;;  %v867_v28 = vld [vmem:[#allocation8 + $0xe4] sm:$0xf] }
  0x1d   :  { %v760_v26 = vor.u32 %v868_v24, %v759_v23  ;;  %v761_v29 = vld [vmem:[#allocation8 + $0xe8] sm:$0xf0]  ;;  %644 = vmatmul.msk.bf16.vlgmr.msra.gmra.mxu1 %vm116_vm0, %v103_v8  ;;  %389 = vmatpush.bf16.msrb.mxu0 %v708_v17  ;;  %v700_v30 = vor.u32 %v851_v25, %v697_v27  ;;  %v687_v31 = vld [vmem:[#allocation8 + $0x50] sm:$0xf]  ;;  %v850_v32 = vld [vmem:[#allocation8 + $0x54] sm:$0xf0] }
  0x1e   :  { %v751_v33 = vld [vmem:[#allocation8 + $0xd0] sm:$0xf]  ;;  %402 = vmatpush.bf16.msrb.mxu1 %v772_v21  ;;  %v764_v34 = vor.u32 %v867_v28, %v761_v29  ;;  %v866_v35 = vld [vmem:[#allocation8 + $0xd4] sm:$0xf0]  ;;  %v849_v36 = vld [vmem:[#allocation8 + $0x54] sm:$0xf]  ;;  %v688_v38 = vor.u32 %v850_v32, %v687_v31 }
  0x1f   :  { %v689_v37 = vld [vmem:[#allocation8 + $0x58] sm:$0xf0]  ;;  %364 = vmatpush.bf16.msra.mxu2 %v696_v22  ;;  %v752_v39 = vor.u32 %v866_v35, %v751_v33  ;;  %v865_v40 = vld [vmem:[#allocation8 + $0xd4] sm:$0xf]  ;;  %v679_v42 = vld [vmem:[#allocation8 + $0x40] sm:$0xf] }
  0x20   :  { %377 = vmatpush.bf16.msra.mxu3 %v760_v26  ;;  %v753_v41 = vld [vmem:[#allocation8 + $0xd8] sm:$0xf0]  ;;  %v848_v43 = vld [vmem:[#allocation8 + $0x44] sm:$0xf0]  ;;  %v743_v44 = vld [vmem:[#allocation8 + $0xc0] sm:$0xf]  ;;  %v692_v46 = vor.u32 %v849_v36, %v689_v37 }
  0x21   :  { %v864_v45 = vld [vmem:[#allocation8 + $0xc4] sm:$0xf0]  ;;  %390 = vmatpush.bf16.msrb.mxu0 %v700_v30  ;;  %v756_v47 = vor.u32 %v865_v40, %v753_v41  ;;  %v847_v48 = vld [vmem:[#allocation8 + $0x44] sm:$0xf]  ;;  %v681_v49 = vld [vmem:[#allocation8 + $0x48] sm:$0xf0]  ;;  %v680_v50 = vor.u32 %v848_v43, %v679_v42 }
  0x22   :  { %403 = vmatpush.bf16.msrb.mxu1 %v764_v34  ;;  %v744_v51 = vor.u32 %v864_v45, %v743_v44  ;;  %v863_v52 = vld [vmem:[#allocation8 + $0xc4] sm:$0xf]  ;;  %v745_v53 = vld [vmem:[#allocation8 + $0xc8] sm:$0xf0]  ;;  %v671_v54 = vld [vmem:[#allocation8 + $0x30] sm:$0xf]  ;;  %v684_v58 = vor.u32 %v847_v48, %v681_v49 }
  0x23   :  { %365 = vmatpush.bf16.msra.mxu2 %v688_v38  ;;  %v846_v55 = vld [vmem:[#allocation8 + $0x34] sm:$0xf0]  ;;  %v735_v56 = vld [vmem:[#allocation8 + $0xb0] sm:$0xf]  ;;  %v748_v59 = vor.u32 %v863_v52, %v745_v53  ;;  %v845_v60 = vld [vmem:[#allocation8 + $0x34] sm:$0xf] }
  0x24   :  { %378 = vmatpush.bf16.msra.mxu3 %v752_v39  ;;  %v862_v57 = vld [vmem:[#allocation8 + $0xb4] sm:$0xf0]  ;;  %v673_v61 = vld [vmem:[#allocation8 + $0x38] sm:$0xf0]  ;;  %v672_v62 = vor.u32 %v846_v55, %v671_v54  ;;  %v861_v0 = vld [vmem:[#allocation8 + $0xb4] sm:$0xf] }
  0x25   :  { %391 = vmatpush.bf16.msrb.mxu0 %v692_v46  ;;  %v736_v63 = vor.u32 %v862_v57, %v735_v56  ;;  %v737_v1 = vld [vmem:[#allocation8 + $0xb8] sm:$0xf0]  ;;  %v676_v2 = vor.u32 %v845_v60, %v673_v61  ;;  %v663_v5 = vld [vmem:[#allocation8 + $0x20] sm:$0xf]  ;;  %v844_v6 = vld [vmem:[#allocation8 + $0x24] sm:$0xf0] }
  0x26   :  { %404 = vmatpush.bf16.msrb.mxu1 %v756_v47  ;;  %v740_v3 = vor.u32 %v861_v0, %v737_v1  ;;  %v147_v4 = vld [vmem:[#allocation7] sm:$0x3]  ;;  %v727_v7 = vld [vmem:[#allocation8 + $0xa0] sm:$0xf]  ;;  %v664_v8 = vor.u32 %v844_v6, %v663_v5  ;;  %v860_v9 = vld [vmem:[#allocation8 + $0xa4] sm:$0xf0] }
  0x27   :  { %366 = vmatpush.bf16.msra.mxu2 %v680_v50  ;;  %149 = vst [vmem:[#allocation1] ss:$9 sm:$0xff] %v147_v4  ;;  %v843_v10 = vld [vmem:[#allocation8 + $0x24] sm:$0xf]  ;;  %v665_v11 = vld [vmem:[#allocation8 + $0x28] sm:$0xf0]  ;;  %v728_v12 = vor.u32 %v860_v9, %v727_v7 }
  0x28   :  { %379 = vmatpush.bf16.msra.mxu3 %v744_v51  ;;  %v668_v13 = vor.u32 %v843_v10, %v665_v11  ;;  %v859_v14 = vld [vmem:[#allocation8 + $0xa4] sm:$0xf]  ;;  %v729_v15 = vld [vmem:[#allocation8 + $0xa8] sm:$0xf0]  ;;  %v655_v17 = vld [vmem:[#allocation8 + $0x10] sm:$0xf] }
  0x29   :  { %392 = vmatpush.bf16.msrb.mxu0 %v684_v58  ;;  %v732_v16 = vor.u32 %v859_v14, %v729_v15  ;;  %v842_v18 = vld [vmem:[#allocation8 + $0x14] sm:$0xf0]  ;;  %v719_v19 = vld [vmem:[#allocation8 + $0x90] sm:$0xf]  ;;  %v841_v22 = vld [vmem:[#allocation8 + $0x14] sm:$0xf] }
  0x2a   :  { %405 = vmatpush.bf16.msrb.mxu1 %v748_v59  ;;  %v656_v20 = vor.u32 %v842_v18, %v655_v17  ;;  %v858_v21 = vld [vmem:[#allocation8 + $0x94] sm:$0xf0]  ;;  %v657_v23 = vld [vmem:[#allocation8 + $0x18] sm:$0xf0]  ;;  %v857_v26 = vld [vmem:[#allocation8 + $0x94] sm:$0xf] }
  0x2b   :  { %367 = vmatpush.bf16.msra.mxu2 %v672_v62  ;;  %v720_v24 = vor.u32 %v858_v21, %v719_v19  ;;  %v660_v25 = vor.u32 %v841_v22, %v657_v23  ;;  %v721_v27 = vld [vmem:[#allocation8 + $0x98] sm:$0xf0]  ;;  %v647_v29 = vld [vmem:[#allocation8] sm:$0xf]  ;;  %v840_v30 = vld [vmem:[#allocation8 + $0x4] sm:$0xf0] }
  0x2c   :  { %380 = vmatpush.bf16.msra.mxu3 %v736_v63  ;;  %v724_v28 = vor.u32 %v857_v26, %v721_v27  ;;  %v711_v31 = vld [vmem:[#allocation8 + $0x80] sm:$0xf]  ;;  %v648_v32 = vor.u32 %v840_v30, %v647_v29  ;;  %v856_v33 = vld [vmem:[#allocation8 + $0x84] sm:$0xf0]  ;;  %v839_v34 = vld [vmem:[#allocation8 + $0x4] sm:$0xf] }
  0x2d   :  { %393 = vmatpush.bf16.msrb.mxu0 %v676_v2  ;;  %v649_v35 = vld [vmem:[#allocation8 + $0x8] sm:$0xf0]  ;;  %v712_v36 = vor.u32 %v856_v33, %v711_v31  ;;  %v855_v38 = vld [vmem:[#allocation8 + $0x84] sm:$0xf]  ;;  %v416_v43 = vld [vmem:[%s1134_s4] sm:$0x3] }
  0x2e   :  { %406 = vmatpush.bf16.msrb.mxu1 %v740_v3  ;;  %v652_v37 = vor.u32 %v839_v34, %v649_v35  ;;  %v713_v39 = vld [vmem:[#allocation8 + $0x88] sm:$0xf0]  ;;  %v150_v41 = vld [vmem:[#allocation1] sm:$0xff]  ;;  %v877_v46 = vld [vmem:[#allocation10 + $0x30] sm:$0xff]  ;;  %s623_s8 = sshll.u32 %s1137_s7, 4  ;;  %s624_s8 = int_to_ptr.hbm [resolvable:$true] %s623_s8 }
  0x2f   :  { %368 = vmatpush.bf16.msra.mxu2 %v664_v8  ;;  %v716_v40 = vor.u32 %v855_v38, %v713_v39  ;;  %v151_v42 = vld [vmem:[#allocation1 + $0x9] sm:$0xff]  ;;  %v878_v44 = vld [vmem:[#allocation10 + $0x38] sm:$0xff]  ;;  %v885_v47 = vld [vmem:[#allocation10 + $0x70] sm:$0xff]  ;;  %v152_v50 = vpack.i.b16 %v150_v41, %v150_v41 }
  0x30   :  { %381 = vmatpush.bf16.msra.mxu3 %v728_v12  ;;  %418 = vst [vmem:[#allocation1] ss:$9 sm:$0xff] %v416_v43  ;;  %v886_v45 = vld [vmem:[#allocation10 + $0x78] sm:$0xff]  ;;  %v876_v48 = vld [vmem:[#allocation10 + $0x28] sm:$0xff]  ;;  %v155_v51 = vpack.i.b16 %v151_v42, %v151_v42  ;;  %v875_v5 = vld [vmem:[#allocation10 + $0x20] sm:$0xff]  ;;  %v598_v42 = vlaneseq }
  0x31   :  { %394 = vmatpush.bf16.msrb.mxu0 %v668_v13  ;;  %v884_v49 = vld [vmem:[#allocation10 + $0x68] sm:$0xff]  ;;  %v154_v52 = vperm.slane %v152_v50, 0  ;;  %v883_v6 = vld [vmem:[#allocation10 + $0x60] sm:$0xff]  ;;  %v874_v7 = vld [vmem:[#allocation10 + $0x18] sm:$0xff] }
  0x32   :  { %407 = vmatpush.bf16.msrb.mxu1 %v732_v16  ;;  %v157_v53 = vperm.slane %v155_v51, 0  ;;  %v882_v8 = vld [vmem:[#allocation10 + $0x58] sm:$0xff]  ;;  %v873_v9 = vld [vmem:[#allocation10 + $0x10] sm:$0xff]  ;;  %v872_v11 = vld [vmem:[#allocation10 + $0x8] sm:$0xff] }
  0x33   :  { %369 = vmatpush.bf16.msra.mxu2 %v656_v20  ;;  %v160_v57 = vunpack.c.l.bf16 %v154_v52  ;;  %v881_v10 = vld [vmem:[#allocation10 + $0x50] sm:$0xff]  ;;  %v880_v12 = vld [vmem:[#allocation10 + $0x48] sm:$0xff]  ;;  %v871_v13 = vld [vmem:[#allocation10] sm:$0xff] }
  0x34   :  { %382 = vmatpush.bf16.msra.mxu3 %v720_v24  ;;  %v161_v58 = vunpack.c.l.bf16 %v157_v53  ;;  %v879_v14 = vld [vmem:[#allocation10 + $0x40] sm:$0xff]  ;;  %v897_v43 = vld [vmem:[%s1136_s6] ss:$0 sm:$0xff]  ;;  %s1063_s6 = smov [#allocation11]  }
  0x35   :  { %395 = vmatpush.bf16.msrb.mxu0 %v660_v25  ;;  %s621_s28 = sshll.u32 %s1063_s6, 4  ;;  %s622_s28 = int_to_ptr.vmem [resolvable:$true] %s621_s28 }
  0x36   :  { %408 = vmatpush.bf16.msrb.mxu1 %v724_v28 }
  0x37   :  { %370 = vmatpush.bf16.msra.mxu2 %v648_v32  ;;  %v419_v15 = vld [vmem:[#allocation1] sm:$0xff]  ;;  %v420_v16 = vld [vmem:[#allocation1 + $0x9] sm:$0xff] }
  0x38   :  { %383 = vmatpush.bf16.msra.mxu3 %v712_v36  ;;  %v421_v19 = vpack.i.b16 %v419_v15, %v419_v15  ;;  %v424_v20 = vpack.i.b16 %v420_v16, %v420_v16 }
  0x39   :  { %396 = vmatpush.bf16.msrb.mxu0 %v652_v37 }
  0x3a   :  { %409 = vmatpush.bf16.msrb.mxu1 %v716_v40  ;;  %v423_v21 = vperm.slane %v421_v19, 0  ;;  %v426_v22 = vperm.slane %v424_v20, 0 }
  0x3b   :  { %572 = vmatpush.bf16.msrb.mxu2 %v878_v44  ;;  %v599_v44 = vand.u32 127, %v598_v42 }
  0x3c   :  { %585 = vmatpush.bf16.msrb.mxu3 %v886_v45  ;;  %v429_v30 = vunpack.c.l.bf16 %v423_v21  ;;  %v430_v31 = vunpack.c.l.bf16 %v426_v22 }
  0x3d   :  { %vm611_vm1 = vcmp.eq.s32.totalorder %v599_v44, 8  ;;  %vm600_vm2 = vcmp.lt.s32.totalorder %v599_v44, 8 }
  0x3f   :  { %573 = vmatpush.bf16.msrb.mxu2 %v877_v46 }
  0x40   :  { %586 = vmatpush.bf16.msrb.mxu3 %v885_v47 }
  0x43   :  { %574 = vmatpush.bf16.msrb.mxu2 %v876_v48 }
  0x44   :  { %587 = vmatpush.bf16.msrb.mxu3 %v884_v49 }
  0x47   :  { %575 = vmatpush.bf16.msrb.mxu2 %v875_v5 }
  0x48   :  { %588 = vmatpush.bf16.msrb.mxu3 %v883_v6 }
  0x4b   :  { %576 = vmatpush.bf16.msrb.mxu2 %v874_v7 }
  0x4c   :  { %589 = vmatpush.bf16.msrb.mxu3 %v882_v8 }
  0x4f   :  { %577 = vmatpush.bf16.msrb.mxu2 %v873_v9 }
  0x50   :  { %590 = vmatpush.bf16.msrb.mxu3 %v881_v10 }
  0x53   :  { %578 = vmatpush.bf16.msrb.mxu2 %v872_v11 }
  0x54   :  { %591 = vmatpush.bf16.msrb.mxu3 %v880_v12 }
  0x57   :  { %579 = vmatpush.bf16.msrb.mxu2 %v871_v13 }
  0x58   :  { %592 = vmatpush.bf16.msrb.mxu3 %v879_v14 }
  0x99   :  { %v129_v54 = vpop.f32.mrf.mxu0 }
  0x9a   :  { %v142_v55 = vpop.f32.mrf.mxu1 }
  0x9b   :  { %v146_v56 = vpack.c.bf16 %v142_v55, %v129_v54 }
  0x9d   :  { %v158_v59 = vunpack.c.l.bf16 %v146_v56  ;;  %v159_v60 = vunpack.c.h.bf16 %v146_v56 }
  0x9f   :  { %v162_v61 = vadd.f32 %v160_v57, %v158_v59  ;;  %v163_v62 = vadd.f32 %v161_v58, %v159_v60 }
  0xa1   :  { %v131_v63 = vpop.f32.mrf.mxu0  ;;  %v167_v0 = vmax.f32 %v162_v61, 0.0  ;;  %v168_v1 = vmax.f32 %v163_v62, 0.0 }
  0xa2   :  { %v144_v2 = vpop.f32.mrf.mxu1 }
  0xa3   :  { %v169_v3 = vpack.c.bf16 %v167_v0, %v167_v0  ;;  %v170_v4 = vpack.c.bf16 %v168_v1, %v168_v1 }
  0xa5   :  { %371 = vmatmul.bf16.vlgmr.msra.gmra.mxu2 %v169_v3  ;;  %384 = vmatmul.bf16.vlgmr.msra.gmra.mxu3 %v170_v4 }
  0xa6   :  { %397 = vmatmul.bf16.vlgmr.msrb.gmra.mxu0 %v169_v3  ;;  %410 = vmatmul.bf16.vlgmr.msrb.gmra.mxu1 %v170_v4 }
 0x123   :  { %v398_v17 = vpop.f32.mrf.mxu0  ;;  %v411_v18 = vpop.f32.mrf.mxu1 }
 0x124   :  { %v412_v25 = vadd.f32 %v411_v18, %v398_v17 }
 0x128   :  { %v372_v23 = vpop.f32.mrf.mxu2  ;;  %v385_v24 = vpop.f32.mrf.mxu3 }
 0x129   :  { %v386_v26 = vadd.f32 %v385_v24, %v372_v23 }
 0x12b   :  { %v415_v27 = vpack.c.bf16 %v412_v25, %v386_v26  ;;  %v400_v28 = vpop.f32.mrf.mxu0  ;;  %v413_v29 = vpop.f32.mrf.mxu1 }
 0x12d   :  { %v427_v32 = vunpack.c.l.bf16 %v415_v27  ;;  %v428_v33 = vunpack.c.h.bf16 %v415_v27 }
 0x12f   :  { %v431_v34 = vadd.f32 %v429_v30, %v427_v32  ;;  %v432_v35 = vadd.f32 %v430_v31, %v428_v33 }
 0x130   :  { %v374_v36 = vpop.f32.mrf.mxu2  ;;  %v387_v37 = vpop.f32.mrf.mxu3 }
 0x131   :  { %v436_v38 = vmax.f32 %v431_v34, 0.0  ;;  %v437_v39 = vmax.f32 %v432_v35, 0.0 }
 0x133   :  { %v438_v40 = vpack.c.bf16 %v436_v38, %v436_v38  ;;  %v439_v41 = vpack.c.bf16 %v437_v39, %v437_v39 }
 0x135   :  { %580 = vmatmul.bf16.vlgmr.msrb.gmra.mxu2 %v438_v40  ;;  %593 = vmatmul.bf16.vlgmr.msrb.gmra.mxu3 %v439_v41 }
 0x1b8   :  { %v581_v45 = vpop.f32.mrf.mxu2  ;;  %v594_v46 = vpop.f32.mrf.mxu3 }
 0x1b9   :  { %v582_v47 = vadd.f32 %v897_v43, %v581_v45 }
 0x1bb   :  { %v595_v48 = vadd.f32 %v594_v46, %v582_v47 }
 0x1bd   :  { %v612_v49 = vsel %vm611_vm1, %v595_v48, 0.0  ;;  %v601_v50 = vsel %vm600_vm2, %v595_v48, -inf }
 0x1be   :  { %602 = vmax.xlane.f32.xlu0 %v601_v50 }
 0x1c0   :  { %v583_v51 = vpop.f32.mrf.mxu2  ;;  %v596_v52 = vpop.f32.mrf.mxu3 }
 0x231   :  { %v603_v53 = vpop.xlane.xlu0 %602 }
 0x232   :  { %v604_v54 = vsub.f32 %v601_v50, %v603_v53 }
 0x234   :  { %v605_v55 = vmul.f32 1.442695, %v604_v54 }
 0x236   :  { %898 = vpow2.f32 %v605_v55 }
 0x23c   :  { %v899_v56 = vpop.eup %898 }
 0x23d   :  { %607 = vadd.xlane.f32.xlu0 %v899_v56 }
 0x2b0   :  { %v608_v57 = vpop.xlane.xlu0 %607 }
 0x2b1   :  { %900 = vrcp.f32 %v608_v57 }
 0x2b7   :  { %v901_v58 = vpop.eup %900 }
 0x2b8   :  { %v610_v59 = vmul.f32 %v901_v58, %v899_v56 }
 0x2ba   :  { %v613_v60 = vadd.f32 %v612_v49, %v610_v59 }
 0x2bc   :  { %v614_v61 = vpack.c.bf16 %v613_v60, %v613_v60 }
 0x2be   :  { %615 = vst [vmem:[#allocation11] sm:$0xf] %v614_v61 }
 0x2bf   :  { %626 = dma.vmem_to_hbm [thread:$0]  %s622_s28, 64, %s624_s8, [#allocation4]  }
 0x2c0   :  { %1052 = dma.done.wait [#allocation4], 64  }
 0x2c1   :  { %1053 = vsyncadd [#allocation4], 4294967232 }
 0x2c2   :  { %631 = vsyncpa [#allocation3], 1 }
 0x2c3   :  { %632 = vsyncpa [#allocation6], 1 }
 0x2c4   :  { %633 = vsyncpa [#allocation9], 1 }
 0x2c5   :  { %634 = vsyncpa [#allocation4], 1 }

</bundles_post_ra>
